<compile_context>
chip_gen: v7x
topology: tpu7x:2x2x1
jax: 0.10.0
libtpu: 0.0.40
codegen_flags: <defaults>
</compile_context>

<pallas_src>
import functools

import jax
import jax.numpy as jnp
from jax.experimental import pallas as pl
from jax.experimental.pallas import tpu as pltpu

LANE = 128
_SMALL_NPAD_MAX = 2048


def _round_up(n, m):
    return ((n + m - 1) // m) * m


def _pad2(m, rows, cols):
    return jnp.pad(m, ((0, rows - m.shape[0]), (0, cols - m.shape[1])))


@functools.lru_cache(maxsize=1)
def _vmem_limit_bytes():
    # Per-generation VMEM budget: ~3/4 of physical (96 MiB v5e/v6e, 48 MiB v7x).
    try:
        phys = int(pltpu.get_tpu_info().vmem_capacity_bytes)
    except Exception:
        phys = 64 * 1024 * 1024
    phys = min(max(phys, 64 * 1024 * 1024), 128 * 1024 * 1024)
    return (phys * 3) // 4


def _choose_tiles(n_pad, vmem_limit):
    tm = min(512, n_pad)
    # v7x shards the "parallel" row axis over 2 TensorCores: keep >= 2 row blocks.
    if n_pad // tm < 2 and n_pad % 256 == 0:
        tm = n_pad // 2
    tk = min(512, n_pad)
    # Bigger contraction tiles on the 128-MiB-VMEM parts (v5e/v6e).
    if vmem_limit >= 80 * 1024 * 1024 and n_pad % 1024 == 0 and n_pad >= 2048:
        tk = 1024
    return tm, tk


# --------------------------------------------------------------------------- kernels

def _gcn_layer_kernel(a_ref, zs_ref, w_ref, b_ref, dinv_ref, out_ref, acc_ref,
                      *, scale_out, zs_resident, tk):
    """One GCN layer: fused feature transform + aggregation + f32 epilogue.

    acc += (A+I)_tile @ ((dinv (.) z)_ktile @ W);  at the last k-step:
    h = relu(dinv_i * acc + b), optionally pre-scaled by dinv_i again so the
    stored value is already the next layer's (dinv (.) z) input.
    """
    k = pl.program_id(1)

    @pl.when(k == 0)
    def _():
        acc_ref[...] = jnp.zeros_like(acc_ref)

    if zs_resident:
        start = pl.multiple_of(k * tk, tk)
        zs = zs_ref[pl.ds(start, tk), :]
    else:
        zs = zs_ref[...]

    xw = jnp.dot(zs, w_ref[...], preferred_element_type=jnp.float32)
    acc_ref[...] += jnp.dot(a_ref[...], xw.astype(a_ref.dtype),
                            preferred_element_type=jnp.float32)

    @pl.when(k == pl.num_programs(1) - 1)
    def _():
        d = dinv_ref[...]                                      # (tm, 1) f32
        h = jnp.maximum(d * acc_ref[...] + b_ref[...], 0.0)    # f32 epilogue
        if scale_out:
            h = d * h                                          # next layer's scaled input
        out_ref[...] = h.astype(out_ref.dtype)


def _fused_small_kernel(*refs, n_layers):
    # Whole multi-layer GCN forward in one kernel (everything VMEM-resident).
    a_ref, zs_ref, dinv_ref = refs[0], refs[1], refs[2]
    out_ref = refs[-1]
    wb = refs[3:-1]

    a = a_ref[...]            # raw (A+I) counts, bf16
    d = dinv_ref[...]         # (n_pad, 1) f32
    zs = zs_ref[...]          # dinv-scaled layer-0 input, bf16
    h = None
    for l in range(n_layers):
        w = wb[2 * l][...]
        b = wb[2 * l + 1][...]
        xw = jnp.dot(zs, w, preferred_element_type=jnp.float32)
        agg = jnp.dot(a, xw.astype(a.dtype), preferred_element_type=jnp.float32)
        h = jnp.maximum(d * agg + b, 0.0)
        if l < n_layers - 1:
            zs = (d * h).astype(jnp.bfloat16)
    out_ref[...] = h


# --------------------------------------------------------------------------- wrappers

def gcn_layer_tiled(a, zs, w, b, dinv, *, tm, tk, scale_out, out_dtype, vmem_limit):
    n_pad = a.shape[0]
    f_in = zs.shape[1]
    f_out = w.shape[1]
    # Keep the (dinv (.) z) operand VMEM-resident (DMA'd once) when it fits.
    zs_resident = (n_pad * f_in * zs.dtype.itemsize) <= vmem_limit // 6
    if zs_resident:
        zs_spec = pl.BlockSpec((n_pad, f_in), lambda i, k: (0, 0))
    else:
        zs_spec = pl.BlockSpec((tk, f_in), lambda i, k: (k, 0))
    kernel = functools.partial(_gcn_layer_kernel, scale_out=scale_out,
                               zs_resident=zs_resident, tk=tk)
    return pl.pallas_call(
        kernel,
        out_shape=jax.ShapeDtypeStruct((n_pad, f_out), out_dtype),
        grid=(n_pad // tm, n_pad // tk),
        in_specs=[pl.BlockSpec((tm, tk), lambda i, k: (i, k)),       # (A+I) tile
                  zs_spec,                                           # scaled input
                  pl.BlockSpec((f_in, f_out), lambda i, k: (0, 0)),  # W resident
                  pl.BlockSpec((1, f_out), lambda i, k: (0, 0)),     # bias resident
                  pl.BlockSpec((tm, 1), lambda i, k: (i, 0))],       # dinv row block
        out_specs=pl.BlockSpec((tm, f_out), lambda i, k: (i, 0)),
        scratch_shapes=[pltpu.VMEM((tm, f_out), jnp.float32)],
        compiler_params=pltpu.CompilerParams(
            dimension_semantics=("parallel", "arbitrary"),
            vmem_limit_bytes=vmem_limit),
    )(a, zs, w, b, dinv)


def fused_forward_small(a, zs, dinv, wbs, *, vmem_limit):
    n_pad = a.shape[0]
    f_out_last = wbs[-1][0].shape[1]
    flat = [a, zs, dinv]
    for w, b in wbs:
        flat.extend([w, b])
    kernel = functools.partial(_fused_small_kernel, n_layers=len(wbs))
    vspec = pl.BlockSpec(memory_space=pltpu.MemorySpace.VMEM)
    return pl.pallas_call(
        kernel,
        out_shape=jax.ShapeDtypeStruct((n_pad, f_out_last), jnp.float32),
        in_specs=[vspec] * len(flat),
        out_specs=vspec,
        compiler_params=pltpu.CompilerParams(vmem_limit_bytes=vmem_limit),
    )(*flat)


# ------------------------------------------------------------------------------- glue

def build_adjacency_padded(edge_index, num_nodes, n_pad):
    """Raw (A + I) edge counts at the padded node size, plus dinv = D^{-1/2}.

    Matches PyG gcn_norm (add_self_loops=True).  The normalization is applied in
    the kernels via the exact factorization
        A_norm @ M == diag(dinv) @ (A+I) @ (diag(dinv) @ M).
    Built directly at the padded shape so the glue makes a single N^2 pass.
    """
    src = edge_index[0]
    dst = edge_index[1]
    loop = jnp.arange(num_nodes, dtype=edge_index.dtype)
    src = jnp.concatenate([src, loop])
    dst = jnp.concatenate([dst, loop])
    a = jnp.zeros((n_pad, n_pad), jnp.float32).at[dst, src].add(1.0)
    deg = jnp.sum(a, axis=1)
    dinv = jnp.where(deg > 0.0, 1.0 / jnp.sqrt(deg), 0.0)
    # Small-integer counts are exact in bf16; the normalization stays in f32.
    return a.astype(jnp.bfloat16), dinv.reshape(n_pad, 1)


def init_params(key, input_dim, hidden_dim, proj_dim, num_layers):
    params = {"gcn": []}
    dims = [input_dim] + [hidden_dim] * num_layers
    for i in range(num_layers):
        key, kw = jax.random.split(key)
        bound = 1.0 / jnp.sqrt(dims[i])
        w = jax.random.uniform(kw, (dims[i], dims[i + 1]), jnp.float32, -bound, bound)
        b = jnp.zeros((1, dims[i + 1]), jnp.float32)
        params["gcn"].append((w, b))
    # Projection-head params exist in the encoder but Target discards the
    # projection output, so they are intentionally unused in the forward below.
    key, k1, k2 = jax.random.split(key, 3)
    bound1 = 1.0 / jnp.sqrt(hidden_dim)
    params["proj_w1"] = jax.random.uniform(k1, (hidden_dim, proj_dim), jnp.float32, -bound1, bound1)
    params["proj_b1"] = jnp.zeros((1, proj_dim), jnp.float32)
    bound2 = 1.0 / jnp.sqrt(proj_dim)
    params["proj_w2"] = jax.random.uniform(k2, (proj_dim, proj_dim), jnp.float32, -bound2, bound2)
    params["proj_b2"] = jnp.zeros((1, proj_dim), jnp.float32)
    params["prelu_alpha"] = jnp.array([0.25], jnp.float32)
    return params


@functools.partial(jax.jit, static_argnames=("num_nodes", "force_tiled"))
def target_forward(params, x, edge_index, num_nodes, force_tiled=False):
    vmem_limit = _vmem_limit_bytes()
    gcn = params["gcn"]
    num_layers = len(gcn)
    in_dim = x.shape[1]
    f_in_p0 = _round_up(in_dim, LANE)
    f_out_last = gcn[-1][0].shape[1]

    # ----- path / padding selection -----------------------------------------
    n_pad_small = _round_up(num_nodes, LANE)
    max_f = max([f_in_p0] + [_round_up(w.shape[1], LANE) for (w, _) in gcn])
    small_bytes = (n_pad_small * n_pad_small * 2          # A (bf16)
                   + n_pad_small * f_in_p0 * 2            # layer-0 input (bf16)
                   + n_pad_small * max_f * 4 * 3          # f32 intermediates
                   + sum(_round_up(w.shape[0], LANE) * _round_up(w.shape[1], LANE) * 2
                         for (w, _) in gcn))
    use_small = ((not force_tiled) and n_pad_small <= _SMALL_NPAD_MAX
                 and small_bytes <= vmem_limit // 2)

    if use_small or force_tiled:
        n_pad = n_pad_small
    else:
        # Pad the node dim to a multiple of the target tile so the dominant A
        # stream never falls back to 128-wide tiles (~3x roofline loss).
        n_pad = _round_up(num_nodes, 512)

    # ----- raw adjacency + degree scaling ------------------------------------
    a_raw, dinv = build_adjacency_padded(edge_index, num_nodes, n_pad)

    # Layer-0 input, pre-scaled by dinv (cheap N x F pass), bf16 for the MXU.
    x_p = _pad2(x, n_pad, f_in_p0)
    zs = (dinv * x_p).astype(jnp.bfloat16)

    # Lane-dense zero-padded weights / biases (bias stays f32 for the f32 epilogue).
    wbs = []
    for (w, b) in gcn:
        f_in, f_out = w.shape
        wbs.append((_pad2(w, _round_up(f_in, LANE), _round_up(f_out, LANE)).astype(jnp.bfloat16),
                    _pad2(b, 1, _round_up(f_out, LANE))))

    # ----- forward ------------------------------------------------------------
    if use_small:
        out = fused_forward_small(a_raw, zs, dinv, wbs, vmem_limit=vmem_limit)
    else:
        tm, tk = _choose_tiles(n_pad, vmem_limit)
        out = zs
        for l, (w_p, b_p) in enumerate(wbs):
            is_last = (l == num_layers - 1)
            out = gcn_layer_tiled(
                a_raw, out, w_p, b_p, dinv, tm=tm, tk=tk,
                scale_out=not is_last,
                out_dtype=jnp.float32 if is_last else jnp.bfloat16,
                vmem_limit=vmem_limit)

    # Target.forward returns only h_target; the encoder's projection head is
    # intentionally skipped because Target discards its output.
    return out[:num_nodes, :f_out_last]


# ------------------------------------------------------------------------------- main

if __name__ == "__main__":
    N = 16          # nodes
    E = 48          # edges
    INPUT_DIM = 16
    HIDDEN_DIM = 32
    PROJ_DIM = 32
    NUM_LAYERS = 2

    key = jax.random.PRNGKey(0)
    kx, ke, kp = jax.random.split(key, 3)

    x = jax.random.normal(kx, (N, INPUT_DIM), jnp.float32)
    edge_index = jax.random.randint(ke, (2, E), 0, N, dtype=jnp.int32)

    params = init_params(kp, INPUT_DIM, HIDDEN_DIM, PROJ_DIM, NUM_LAYERS)

    # Small-graph fully-fused path.
    h_small = target_forward(params, x, edge_index, N)
    # Tiled (large-graph) path, forced at the small size to validate both kernels.
    h_tiled = target_forward(params, x, edge_index, N, force_tiled=True)
    jax.block_until_ready((h_small, h_tiled))

    assert h_small.shape == (N, HIDDEN_DIM)
    assert h_tiled.shape == (N, HIDDEN_DIM)
    assert bool(jnp.all(jnp.isfinite(h_small)))
    assert bool(jnp.all(jnp.isfinite(h_tiled)))
    assert bool(jnp.allclose(h_small, h_tiled, rtol=1e-2, atol=1e-2))
    print("KERNEL_OK")
</pallas_src>

<mosaic_0001>
module attributes {stable_mosaic.version = 11 : i64} {
  func.func private @main(%arg0: i32) attributes {dimension_semantics = [#tpu.dimension_semantics<core_parallel>], iteration_bounds = array<i64: 2>, tpu.core_type = #tpu.core_type<sc_scalar_subcore>, window_params = []} {
    return
  }
}

module attributes {stable_mosaic.version = 11 : i64} {
  func.func private @main(%arg0: i32) attributes {dimension_semantics = [#tpu.dimension_semantics<core_parallel>], iteration_bounds = array<i64: 2>, tpu.core_type = #tpu.core_type<sc_scalar_subcore>, window_params = []} {
    return
  }
}

module attributes {stable_mosaic.version = 11 : i64} {
  func.func @_fused_small_kernel(%arg0: memref<128x128xbf16, #tpu.memory_space<vmem>>, %arg1: memref<128x128xbf16, #tpu.memory_space<vmem>>, %arg2: memref<128x1xf32, #tpu.memory_space<vmem>>, %arg3: memref<128x128xbf16, #tpu.memory_space<vmem>>, %arg4: memref<1x128xf32, #tpu.memory_space<vmem>>, %arg5: memref<128x128xbf16, #tpu.memory_space<vmem>>, %arg6: memref<1x128xf32, #tpu.memory_space<vmem>>, %arg7: memref<128x128xf32, #tpu.memory_space<vmem>>) attributes {dimension_semantics = [], scalar_prefetch = 0 : i64, scratch_operands = 0 : i64, tpu.core_type = #tpu.core_type<tc>} {
    %c0 = arith.constant 0 : index
    %c0_0 = arith.constant 0 : index
    %0 = vector.load %arg0[%c0, %c0_0] : memref<128x128xbf16, #tpu.memory_space<vmem>>, vector<128x128xbf16>
    %c0_1 = arith.constant 0 : index
    %c0_2 = arith.constant 0 : index
    %1 = vector.load %arg2[%c0_1, %c0_2] : memref<128x1xf32, #tpu.memory_space<vmem>>, vector<128x1xf32>
    %c0_3 = arith.constant 0 : index
    %c0_4 = arith.constant 0 : index
    %2 = vector.load %arg1[%c0_3, %c0_4] : memref<128x128xbf16, #tpu.memory_space<vmem>>, vector<128x128xbf16>
    %c0_5 = arith.constant 0 : index
    %c0_6 = arith.constant 0 : index
    %3 = vector.load %arg3[%c0_5, %c0_6] : memref<128x128xbf16, #tpu.memory_space<vmem>>, vector<128x128xbf16>
    %c0_7 = arith.constant 0 : index
    %c0_8 = arith.constant 0 : index
    %4 = vector.load %arg4[%c0_7, %c0_8] : memref<1x128xf32, #tpu.memory_space<vmem>>, vector<1x128xf32>
    %cst = arith.constant dense<0.000000e+00> : vector<128x128xf32>
    %5 = tpu.matmul %2, %3, %cst {dimension_numbers = #tpu.dot_dimension_numbers<[1], [0], [0], [1], [0, 0, 1, 1], [], []>} : vector<128x128xbf16>, vector<128x128xbf16>, vector<128x128xf32> -> vector<128x128xf32>
    %6 = arith.truncf %5 : vector<128x128xf32> to vector<128x128xbf16>
    %cst_9 = arith.constant dense<0.000000e+00> : vector<128x128xf32>
    %7 = tpu.matmul %0, %6, %cst_9 {dimension_numbers = #tpu.dot_dimension_numbers<[1], [0], [0], [1], [0, 0, 1, 1], [], []>} : vector<128x128xbf16>, vector<128x128xbf16>, vector<128x128xf32> -> vector<128x128xf32>
    %8 = vector.broadcast %1 : vector<128x1xf32> to vector<128x128xf32>
    %9 = arith.mulf %8, %7 : vector<128x128xf32>
    %10 = vector.broadcast %4 : vector<1x128xf32> to vector<128x128xf32>
    %11 = arith.addf %9, %10 : vector<128x128xf32>
    %cst_10 = arith.constant 0.000000e+00 : f32
    %12 = vector.broadcast %cst_10 : f32 to vector<128x128xf32>
    %13 = arith.maximumf %11, %12 : vector<128x128xf32>
    %14 = vector.broadcast %1 : vector<128x1xf32> to vector<128x128xf32>
    %15 = arith.mulf %14, %13 : vector<128x128xf32>
    %16 = arith.truncf %15 : vector<128x128xf32> to vector<128x128xbf16>
    %c0_11 = arith.constant 0 : index
    %c0_12 = arith.constant 0 : index
    %17 = vector.load %arg5[%c0_11, %c0_12] : memref<128x128xbf16, #tpu.memory_space<vmem>>, vector<128x128xbf16>
    %c0_13 = arith.constant 0 : index
    %c0_14 = arith.constant 0 : index
    %18 = vector.load %arg6[%c0_13, %c0_14] : memref<1x128xf32, #tpu.memory_space<vmem>>, vector<1x128xf32>
    %cst_15 = arith.constant dense<0.000000e+00> : vector<128x128xf32>
    %19 = tpu.matmul %16, %17, %cst_15 {dimension_numbers = #tpu.dot_dimension_numbers<[1], [0], [0], [1], [0, 0, 1, 1], [], []>} : vector<128x128xbf16>, vector<128x128xbf16>, vector<128x128xf32> -> vector<128x128xf32>
    %20 = arith.truncf %19 : vector<128x128xf32> to vector<128x128xbf16>
    %cst_16 = arith.constant dense<0.000000e+00> : vector<128x128xf32>
    %21 = tpu.matmul %0, %20, %cst_16 {dimension_numbers = #tpu.dot_dimension_numbers<[1], [0], [0], [1], [0, 0, 1, 1], [], []>} : vector<128x128xbf16>, vector<128x128xbf16>, vector<128x128xf32> -> vector<128x128xf32>
    %22 = vector.broadcast %1 : vector<128x1xf32> to vector<128x128xf32>
    %23 = arith.mulf %22, %21 : vector<128x128xf32>
    %24 = vector.broadcast %18 : vector<1x128xf32> to vector<128x128xf32>
    %25 = arith.addf %23, %24 : vector<128x128xf32>
    %cst_17 = arith.constant 0.000000e+00 : f32
    %26 = vector.broadcast %cst_17 : f32 to vector<128x128xf32>
    %27 = arith.maximumf %25, %26 : vector<128x128xf32>
    %c0_18 = arith.constant 0 : index
    %c0_19 = arith.constant 0 : index
    %28 = vector.load %arg7[%c0_18, %c0_19] : memref<128x128xf32, #tpu.memory_space<vmem>>, vector<128x128xf32>
    tpu.vector_store %arg7[%c0_18, %c0_19], %27 {strides = array<i32>} : memref<128x128xf32, #tpu.memory_space<vmem>>, vector<128x128xf32>,
    return
  }
}

</mosaic_0001>

<bundles_post_ra>
// kernel: target_forward.1
= control target key start
LH: loop header
LB: loop body
LE: loop exit
PB: predicated region body
PF: predicated region fallthrough
CT: control target
= control target key end

     0   :  { %v1198_v17 = vmov 0   ;;  %s1585_s3 = inlined_call_operand.vmem [shape: bf16[128,128], index: 3, kind: input, shape index: {}]   ;;  %s1586_s1 = inlined_call_operand.vmem [shape: bf16[128,128], index: 1, kind: input, shape index: {}]   ;;  %s1587_s0 = inlined_call_operand.vmem [shape: bf16[128,128], index: 0, kind: input, shape index: {}]   ;;  %s1588_s2 = inlined_call_operand.vmem [shape: f32[128,1], index: 2, kind: input, shape index: {}]   ;;  %s1589_s5 = inlined_call_operand.vmem [shape: bf16[128,128], index: 5, kind: input, shape index: {}]   ;;  %s1590_s4 = inlined_call_operand.vmem [shape: f32[1,128], index: 4, kind: input, shape index: {}]   ;;  %s1591_s6 = inlined_call_operand.vmem [shape: f32[1,128], index: 6, kind: input, shape index: {}]   ;;  %s1592_s7 = inlined_call_operand.vmem [shape: f32[128,128], index: 7, kind: output, shape index: {}]  }
   0x1   :  { %v1166_v0 = vld [vmem:[%s1585_s3] sm:$0xff]   ;;  %v1167_v1 = vld [vmem:[%s1585_s3 + $0x8] sm:$0xff]   ;;  %v1168_v2 = vld [vmem:[%s1585_s3 + $0x10] sm:$0xff]   ;;  %1164 = vset.pattern.permute.xlu0 %v1198_v17  ;;  %1165 = vset.pattern.permute.xlu1 %v1198_v17 }
   0x2   :  { %1035 = vmatprep.subr.bf16.mxu0 %v1166_v0  ;;  %v1169_v3 = vld [vmem:[%s1585_s3 + $0x18] sm:$0xff]   ;;  %v1174_v4 = vld [vmem:[%s1586_s1] sm:$0xff]   ;;  %v1171_v6 = vld [vmem:[%s1585_s3 + $0x28] sm:$0xff]  }
   0x3   :  { %1036 = vmatpush3.bf16.msra.mxu0 %v1166_v0  ;;  %1051 = vmatprep.mubr.bf16.mxu0 %v1174_v4  ;;  %v1170_v5 = vld [vmem:[%s1585_s3 + $0x20] sm:$0xff]   ;;  %v1172_v7 = vld [vmem:[%s1585_s3 + $0x30] sm:$0xff]   ;;  %v1173_v8 = vld [vmem:[%s1585_s3 + $0x38] sm:$0xff]  }
   0x4   :  { %1037 = vmatprep.subr.bf16.mxu0 %v1167_v1  ;;  %v1175_v9 = vld [vmem:[%s1586_s1 + $0x8] sm:$0xff]   ;;  %v1176_v10 = vld [vmem:[%s1586_s1 + $0x10] sm:$0xff]   ;;  %v1177_v11 = vld [vmem:[%s1586_s1 + $0x18] sm:$0xff]  }
   0x5   :  { %v1178_v12 = vld [vmem:[%s1586_s1 + $0x20] sm:$0xff]   ;;  %v1179_v13 = vld [vmem:[%s1586_s1 + $0x28] sm:$0xff]   ;;  %v1180_v14 = vld [vmem:[%s1586_s1 + $0x30] sm:$0xff]  }
   0x6   :  { %v1181_v15 = vld [vmem:[%s1586_s1 + $0x38] sm:$0xff]   ;;  %v1290_v16 = vld [vmem:[%s1587_s0] sm:$0xff]   ;;  %v45_v19 = vld [vmem:[%s1588_s2 + $0x10] sm:$0xff] }
   0x7   :  { %1038 = vmatpush3.bf16.msra.mxu0 %v1167_v1  ;;  %1083 = vmatprep.mubr.bf16.mxu1 %v1290_v16  ;;  %v43_v18 = vld [vmem:[%s1588_s2] sm:$0xff]  ;;  %v44_v20 = vld [vmem:[%s1588_s2 + $0x8] sm:$0xff]  ;;  %v46_v21 = vld [vmem:[%s1588_s2 + $0x18] sm:$0xff] }
   0x8   :  { %1039 = vmatprep.subr.bf16.mxu0 %v1168_v2  ;;  %440 = vperm.xlu0 %1164, %v43_v18   ;;  %v47_v22 = vld [vmem:[%s1588_s2 + $0x20] sm:$0xff]  ;;  %v48_v23 = vld [vmem:[%s1588_s2 + $0x28] sm:$0xff]  ;;  %v49_v24 = vld [vmem:[%s1588_s2 + $0x30] sm:$0xff] }
   0x9   :  { %450 = vperm.xlu1 %1165, %v45_v19   ;;  %v50_v25 = vld [vmem:[%s1588_s2 + $0x38] sm:$0xff]  ;;  %v1190_v26 = vld [vmem:[%s1589_s5] sm:$0xff]   ;;  %v52_v28 = vld [vmem:[%s1588_s2 + $0x48] sm:$0xff] }
   0xa   :  { %v51_v27 = vld [vmem:[%s1588_s2 + $0x40] sm:$0xff]  ;;  %v1191_v29 = vld [vmem:[%s1589_s5 + $0x8] sm:$0xff]   ;;  %v53_v30 = vld [vmem:[%s1588_s2 + $0x50] sm:$0xff] }
   0xb   :  { %1040 = vmatpush3.bf16.msra.mxu0 %v1168_v2  ;;  %v54_v31 = vld [vmem:[%s1588_s2 + $0x58] sm:$0xff]  ;;  %v1192_v32 = vld [vmem:[%s1589_s5 + $0x10] sm:$0xff]   ;;  %v55_v33 = vld [vmem:[%s1588_s2 + $0x60] sm:$0xff] }
   0xc   :  { %1041 = vmatprep.subr.bf16.mxu0 %v1169_v3  ;;  %445 = vperm.xlu0 %1164, %v44_v20   ;;  %v56_v34 = vld [vmem:[%s1588_s2 + $0x68] sm:$0xff]  ;;  %v1193_v35 = vld [vmem:[%s1589_s5 + $0x18] sm:$0xff]   ;;  %v57_v36 = vld [vmem:[%s1588_s2 + $0x70] sm:$0xff] }
   0xd   :  { %455 = vperm.xlu1 %1165, %v46_v21   ;;  %v58_v37 = vld [vmem:[%s1588_s2 + $0x78] sm:$0xff]  ;;  %v1194_v38 = vld [vmem:[%s1589_s5 + $0x20] sm:$0xff]   ;;  %v1359_v63 = vld [vmem:[%s1587_s0 + $0x8] sm:$0xff]  }
   0xe   :  { %v1364_v0 = vld [vmem:[%s1587_s0 + $0x10] sm:$0xff]   ;;  %v1371_v1 = vld [vmem:[%s1587_s0 + $0x18] sm:$0xff]   ;;  %v1376_v2 = vld [vmem:[%s1587_s0 + $0x20] sm:$0xff]  }
   0xf   :  { %1042 = vmatpush3.bf16.msra.mxu0 %v1169_v3  ;;  %v1383_v3 = vld [vmem:[%s1587_s0 + $0x28] sm:$0xff]   ;;  %v1388_v4 = vld [vmem:[%s1587_s0 + $0x30] sm:$0xff]  }
  0x10   :  { %1043 = vmatprep.subr.bf16.mxu0 %v1170_v5  ;;  %460 = vperm.xlu0 %1164, %v47_v22  }
  0x11   :  { %465 = vperm.xlu1 %1165, %v48_v23  }
  0x13   :  { %1044 = vmatpush3.bf16.msra.mxu0 %v1170_v5  ;;  %v1395_v5 = vld [vmem:[%s1587_s0 + $0x38] sm:$0xff]  }
  0x14   :  { %1045 = vmatprep.subr.bf16.mxu0 %v1171_v6  ;;  %470 = vperm.xlu0 %1164, %v49_v24  }
  0x15   :  { %475 = vperm.xlu1 %1165, %v50_v25  }
  0x17   :  { %1046 = vmatpush3.bf16.msra.mxu0 %v1171_v6  ;;  %v1195_v6 = vld [vmem:[%s1589_s5 + $0x28] sm:$0xff]  }
  0x18   :  { %1047 = vmatprep.subr.bf16.mxu0 %v1172_v7  ;;  %480 = vperm.xlu0 %1164, %v51_v27  }
  0x19   :  { %485 = vperm.xlu1 %1165, %v52_v28  }
  0x1b   :  { %1048 = vmatpush3.bf16.msra.mxu0 %v1172_v7  ;;  %v1196_v7 = vld [vmem:[%s1589_s5 + $0x30] sm:$0xff]  }
  0x1c   :  { %1049 = vmatprep.subr.bf16.mxu0 %v1173_v8  ;;  %490 = vperm.xlu0 %1164, %v53_v30  }
  0x1d   :  { %495 = vperm.xlu1 %1165, %v54_v31  }
  0x1f   :  { %1050 = vmatpush3.bf16.msra.mxu0 %v1173_v8  ;;  %v1197_v8 = vld [vmem:[%s1589_s5 + $0x38] sm:$0xff]  }
  0x20   :  { %1099 = vmatprep.subr.bf16.mxu0 %v1190_v26  ;;  %500 = vperm.xlu0 %1164, %v55_v33  }
  0x21   :  { %505 = vperm.xlu1 %1165, %v56_v34  }
  0x22   :  { %1052 = vmatmul.mubr.bf16.vlgmr.msra.gmra.mrb[0].mxu0 %v1175_v9 }
  0x23   :  { %1055 = vmatprep.mubr.bf16.mxu0 %v1176_v10  ;;  %1100 = vmatpush3.bf16.msra.mxu0 %v1190_v26 }
  0x24   :  { %1101 = vmatprep.subr.bf16.mxu0 %v1191_v29  ;;  %510 = vperm.xlu0 %1164, %v57_v36  }
  0x25   :  { %515 = vperm.xlu1 %1165, %v58_v37  }
  0x27   :  { %1102 = vmatpush3.bf16.msra.mxu0 %v1191_v29 }
  0x28   :  { %1103 = vmatprep.subr.bf16.mxu0 %v1192_v32 }
  0x2a   :  { %1056 = vmatmul.mubr.bf16.gmra.mrb[4].mxu0 %v1177_v11 }
  0x2b   :  { %1059 = vmatprep.mubr.bf16.mxu0 %v1178_v12  ;;  %1104 = vmatpush3.bf16.msra.mxu0 %v1192_v32 }
  0x2c   :  { %1105 = vmatprep.subr.bf16.mxu0 %v1193_v35 }
  0x2f   :  { %1106 = vmatpush3.bf16.msra.mxu0 %v1193_v35 }
  0x30   :  { %1107 = vmatprep.subr.bf16.mxu0 %v1194_v38 }
  0x32   :  { %1060 = vmatmul.mubr.bf16.gmra.mrb[8].mxu0 %v1179_v13 }
  0x33   :  { %1063 = vmatprep.mubr.bf16.mxu0 %v1180_v14  ;;  %1108 = vmatpush3.bf16.msra.mxu0 %v1194_v38 }
  0x34   :  { %1109 = vmatprep.subr.bf16.mxu0 %v1195_v6 }
  0x37   :  { %1110 = vmatpush3.bf16.msra.mxu0 %v1195_v6 }
  0x38   :  { %1111 = vmatprep.subr.bf16.mxu0 %v1196_v7 }
  0x3a   :  { %1064 = vmatmul.mubr.bf16.gmra.mrb[12].mxu0 %v1181_v15 }
  0x3b   :  { %1112 = vmatpush3.bf16.msra.mxu0 %v1196_v7 }
  0x3c   :  { %1113 = vmatprep.subr.bf16.mxu0 %v1197_v8 }
  0x3f   :  { %1114 = vmatpush3.bf16.msra.mxu0 %v1197_v8 }
  0x87   :  { %v1408_v9 = vpop.permute.xlu0 %440 }
  0x88   :  { %v1410_v10 = vpop.permute.xlu1 %450 }
  0x8b   :  { %v1412_v11 = vpop.permute.xlu0 %445 }
  0x8c   :  { %v1414_v12 = vpop.permute.xlu1 %455 }
  0x8f   :  { %v1416_v13 = vpop.permute.xlu0 %460 }
  0x90   :  { %v1418_v14 = vpop.permute.xlu1 %465 }
  0x93   :  { %v1420_v15 = vpop.permute.xlu0 %470 }
  0x94   :  { %v1428_v20 = vpop.permute.xlu1 %475 }
  0x97   :  { %v1436_v30 = vpop.permute.xlu0 %480 }
  0x98   :  { %v1439_v34 = vpop.permute.xlu1 %485 }
  0xf5   :  { %v1053_v39 = vpop.f32.mrb[0].mxu0 }
  0xf6   :  { %v222_v40 = vpop.f32.mrb[1].mxu0 }
  0xf7   :  { %v1054_v41 = vpop.f32.mrb[2].mxu0 }
  0xf8   :  { %v286_v42 = vpack.c.bf16 %v1054_v41, %v1053_v39  ;;  %v225_v43 = vpop.f32.mrb[3].mxu0 }
  0xf9   :  { %v285_v44 = vpack.c.bf16 %v225_v43, %v222_v40 }
  0xfb   :  { %1067 = vmatprep.subr.bf16.mxu1 %v285_v44 }
  0xfc   :  { %1068 = vmatpush3.bf16.msra.mxu1 %v285_v44 }
  0xfd   :  { %v1057_v45 = vpop.f32.mrb[4].mxu0  ;;  %1069 = vmatprep.subr.bf16.mxu1 %v286_v42 }
  0xfe   :  { %v238_v46 = vpop.f32.mrb[5].mxu0 }
  0xff   :  { %v1058_v47 = vpop.f32.mrb[6].mxu0 }
 0x100   :  { %v288_v48 = vpack.c.bf16 %v1058_v47, %v1057_v45  ;;  %v241_v49 = vpop.f32.mrb[7].mxu0  ;;  %1070 = vmatpush3.bf16.msra.mxu1 %v286_v42 }
 0x101   :  { %v287_v50 = vpack.c.bf16 %v241_v49, %v238_v46  ;;  %v1449_v49 = vpop.permute.xlu0 %490 }
 0x103   :  { %1071 = vmatprep.subr.bf16.mxu1 %v287_v50 }
 0x104   :  { %1072 = vmatpush3.bf16.msra.mxu1 %v287_v50 }
 0x105   :  { %v1061_v51 = vpop.f32.mrb[8].mxu0  ;;  %1073 = vmatprep.subr.bf16.mxu1 %v288_v48  ;;  %v1460_v8 = vpop.permute.xlu0 %500 }
 0x106   :  { %v254_v52 = vpop.f32.mrb[9].mxu0 }
 0x107   :  { %v1062_v53 = vpop.f32.mrb[10].mxu0 }
 0x108   :  { %v290_v54 = vpack.c.bf16 %v1062_v53, %v1061_v51  ;;  %v257_v55 = vpop.f32.mrb[11].mxu0  ;;  %1074 = vmatpush3.bf16.msra.mxu1 %v288_v48 }
 0x109   :  { %v289_v56 = vpack.c.bf16 %v257_v55, %v254_v52  ;;  %v1454_v55 = vpop.permute.xlu1 %495 }
 0x10b   :  { %1075 = vmatprep.subr.bf16.mxu1 %v289_v56 }
 0x10c   :  { %1076 = vmatpush3.bf16.msra.mxu1 %v289_v56 }
 0x10d   :  { %v1065_v57 = vpop.f32.mrb[12].mxu0  ;;  %1077 = vmatprep.subr.bf16.mxu1 %v290_v54 }
 0x10e   :  { %v270_v58 = vpop.f32.mrb[13].mxu0 }
 0x10f   :  { %v1066_v59 = vpop.f32.mrb[14].mxu0 }
 0x110   :  { %v292_v60 = vpack.c.bf16 %v1066_v59, %v1065_v57  ;;  %v273_v61 = vpop.f32.mrb[15].mxu0  ;;  %1078 = vmatpush3.bf16.msra.mxu1 %v290_v54 }
 0x111   :  { %v291_v62 = vpack.c.bf16 %v273_v61, %v270_v58 }
 0x113   :  { %1079 = vmatprep.subr.bf16.mxu1 %v291_v62 }
 0x114   :  { %1080 = vmatpush3.bf16.msra.mxu1 %v291_v62 }
 0x115   :  { %1081 = vmatprep.subr.bf16.mxu1 %v292_v60 }
 0x118   :  { %1082 = vmatpush3.bf16.msra.mxu1 %v292_v60 }
 0x11b   :  { %1084 = vmatmul.mubr.bf16.vlgmr.msra.gmra.mrb[0].mxu1 %v1359_v63 }
 0x11c   :  { %1087 = vmatprep.mubr.bf16.mxu1 %v1364_v0 }
 0x123   :  { %1088 = vmatmul.mubr.bf16.gmra.mrb[4].mxu1 %v1371_v1 }
 0x124   :  { %1091 = vmatprep.mubr.bf16.mxu1 %v1376_v2 }
 0x12b   :  { %1092 = vmatmul.mubr.bf16.gmra.mrb[8].mxu1 %v1383_v3 }
 0x12c   :  { %1095 = vmatprep.mubr.bf16.mxu1 %v1388_v4 }
 0x133   :  { %1096 = vmatmul.mubr.bf16.gmra.mrb[12].mxu1 %v1395_v5 }
 0x134   :  { %1147 = vmatprep.mubr.bf16.mxu1 %v1290_v16  ;;  %v1425_v16 = vld [vmem:[%s1590_s4] ss:$0 sm:$0xff] }
 0x1ee   :  { %v1085_v17 = vpop.f32.mrb[0].mxu1 }
 0x1ef   :  { %v520_v18 = vmul.f32 %v1085_v17, %v1410_v10  ;;  %v375_v19 = vpop.f32.mrb[1].mxu1 }
 0x1f0   :  { %v518_v21 = vmul.f32 %v1408_v9, %v375_v19  ;;  %v1086_v22 = vpop.f32.mrb[2].mxu1 }
 0x1f1   :  { %v542_v23 = vadd.f32 %v1425_v16, %v520_v18  ;;  %v521_v24 = vmul.f32 %v1086_v22, %v1414_v12  ;;  %v378_v25 = vpop.f32.mrb[3].mxu1 }
 0x1f2   :  { %v540_v26 = vadd.f32 %v1425_v16, %v518_v21  ;;  %v519_v27 = vmul.f32 %v1412_v11, %v378_v25 }
 0x1f3   :  { %v558_v28 = vmax.f32 %v542_v23, 0.0  ;;  %v543_v29 = vadd.f32 %v1425_v16, %v521_v24 }
 0x1f4   :  { %v556_v31 = vmax.f32 %v540_v26, 0.0  ;;  %v541_v32 = vadd.f32 %v1425_v16, %v519_v27  ;;  %v1467_v26 = vpop.permute.xlu1 %505 }
 0x1f5   :  { %v559_v33 = vmax.f32 %v543_v29, 0.0  ;;  %v574_v37 = vmul.f32 %v558_v28, %v1410_v10 }
 0x1f6   :  { %v557_v35 = vmax.f32 %v541_v32, 0.0  ;;  %v1089_v36 = vpop.f32.mrb[4].mxu1  ;;  %v572_v41 = vmul.f32 %v556_v31, %v1408_v9 }
 0x1f7   :  { %v575_v38 = vmul.f32 %v559_v33, %v1414_v12  ;;  %v524_v39 = vmul.f32 %v1089_v36, %v1420_v15  ;;  %v391_v40 = vpop.f32.mrb[5].mxu1 }
 0x1f8   :  { %v573_v42 = vmul.f32 %v557_v35, %v1412_v11  ;;  %v522_v43 = vmul.f32 %v1416_v13, %v391_v40  ;;  %v1090_v44 = vpop.f32.mrb[6].mxu1 }
 0x1f9   :  { %v589_v45 = vpack.c.bf16 %v575_v38, %v574_v37  ;;  %v546_v46 = vadd.f32 %v1425_v16, %v524_v39  ;;  %v525_v47 = vmul.f32 %v1090_v44, %v1428_v20  ;;  %v394_v48 = vpop.f32.mrb[7].mxu1  ;;  %v1473_v37 = vpop.permute.xlu0 %510 }
 0x1fa   :  { %v544_v50 = vadd.f32 %v1425_v16, %v522_v43  ;;  %v523_v51 = vmul.f32 %v1418_v14, %v394_v48  ;;  %v588_v52 = vpack.c.bf16 %v573_v42, %v572_v41  ;;  %v1478_v44 = vpop.permute.xlu1 %515 }
 0x1fb   :  { %v562_v53 = vmax.f32 %v546_v46, 0.0  ;;  %v547_v54 = vadd.f32 %v1425_v16, %v525_v47 }
 0x1fc   :  { %v560_v56 = vmax.f32 %v544_v50, 0.0  ;;  %v545_v57 = vadd.f32 %v1425_v16, %v523_v51  ;;  %1115 = vmatprep.mubr.bf16.mxu0 %v588_v52 }
 0x1fd   :  { %v563_v58 = vmax.f32 %v547_v54, 0.0  ;;  %1116 = vmatmul.mubr.bf16.vlgmr.msra.gmra.mrb[16].mxu0 %v589_v45  ;;  %v578_v61 = vmul.f32 %v562_v53, %v1420_v15 }
 0x1fe   :  { %v561_v59 = vmax.f32 %v545_v57, 0.0  ;;  %v1093_v60 = vpop.f32.mrb[8].mxu1  ;;  %v576_v17 = vmul.f32 %v560_v56, %v1416_v13 }
 0x1ff   :  { %v579_v62 = vmul.f32 %v563_v58, %v1428_v20  ;;  %v528_v6 = vmul.f32 %v1093_v60, %v1449_v49  ;;  %v407_v7 = vpop.f32.mrb[9].mxu1 }
 0x200   :  { %v577_v18 = vmul.f32 %v561_v59, %v1418_v14  ;;  %v526_v19 = vmul.f32 %v1436_v30, %v407_v7  ;;  %v1094_v21 = vpop.f32.mrb[10].mxu1 }
 0x201   :  { %v550_v22 = vadd.f32 %v1425_v16, %v528_v6  ;;  %v529_v23 = vmul.f32 %v1094_v21, %v1454_v55  ;;  %v410_v24 = vpop.f32.mrb[11].mxu1  ;;  %v591_v25 = vpack.c.bf16 %v579_v62, %v578_v61 }
 0x202   :  { %v548_v27 = vadd.f32 %v1425_v16, %v526_v19  ;;  %v527_v28 = vmul.f32 %v1439_v34, %v410_v24  ;;  %v590_v29 = vpack.c.bf16 %v577_v18, %v576_v17 }
 0x203   :  { %v566_v31 = vmax.f32 %v550_v22, 0.0  ;;  %v551_v32 = vadd.f32 %v1425_v16, %v529_v23 }
 0x204   :  { %v564_v33 = vmax.f32 %v548_v27, 0.0  ;;  %v549_v35 = vadd.f32 %v1425_v16, %v527_v28  ;;  %1119 = vmatprep.mubr.bf16.mxu0 %v590_v29 }
 0x205   :  { %v567_v36 = vmax.f32 %v551_v32, 0.0  ;;  %1120 = vmatmul.mubr.bf16.gmra.mrb[20].mxu0 %v591_v25  ;;  %v582_v40 = vmul.f32 %v566_v31, %v1449_v49 }
 0x206   :  { %v565_v38 = vmax.f32 %v549_v35, 0.0  ;;  %v1097_v39 = vpop.f32.mrb[12].mxu1  ;;  %v580_v45 = vmul.f32 %v564_v33, %v1436_v30 }
 0x207   :  { %v583_v41 = vmul.f32 %v567_v36, %v1454_v55  ;;  %v532_v42 = vmul.f32 %v1097_v39, %v1473_v37  ;;  %v423_v43 = vpop.f32.mrb[13].mxu1 }
 0x208   :  { %v581_v46 = vmul.f32 %v565_v38, %v1439_v34  ;;  %v530_v47 = vmul.f32 %v1460_v8, %v423_v43  ;;  %v1098_v48 = vpop.f32.mrb[14].mxu1 }
 0x209   :  { %v554_v50 = vadd.f32 %v1425_v16, %v532_v42  ;;  %v533_v51 = vmul.f32 %v1098_v48, %v1478_v44  ;;  %v426_v52 = vpop.f32.mrb[15].mxu1  ;;  %v593_v53 = vpack.c.bf16 %v583_v41, %v582_v40 }
 0x20a   :  { %v552_v54 = vadd.f32 %v1425_v16, %v530_v47  ;;  %v531_v56 = vmul.f32 %v1467_v26, %v426_v52  ;;  %v592_v57 = vpack.c.bf16 %v581_v46, %v580_v45  ;;  %v1503_v52 = vld [vmem:[%s1591_s6] ss:$0 sm:$0xff] }
 0x20b   :  { %v570_v58 = vmax.f32 %v554_v50, 0.0  ;;  %v555_v59 = vadd.f32 %v1425_v16, %v533_v51 }
 0x20c   :  { %v568_v60 = vmax.f32 %v552_v54, 0.0  ;;  %v553_v61 = vadd.f32 %v1425_v16, %v531_v56  ;;  %1123 = vmatprep.mubr.bf16.mxu0 %v592_v57 }
 0x20d   :  { %v571_v62 = vmax.f32 %v555_v59, 0.0  ;;  %1124 = vmatmul.mubr.bf16.gmra.mrb[24].mxu0 %v593_v53  ;;  %v586_v7 = vmul.f32 %v570_v58, %v1473_v37 }
 0x20e   :  { %v569_v6 = vmax.f32 %v553_v61, 0.0  ;;  %v584_v18 = vmul.f32 %v568_v60, %v1460_v8 }
 0x20f   :  { %v587_v17 = vmul.f32 %v571_v62, %v1478_v44 }
 0x210   :  { %v585_v19 = vmul.f32 %v569_v6, %v1467_v26 }
 0x211   :  { %v595_v21 = vpack.c.bf16 %v587_v17, %v586_v7 }
 0x212   :  { %v594_v22 = vpack.c.bf16 %v585_v19, %v584_v18 }
 0x214   :  { %1127 = vmatprep.mubr.bf16.mxu0 %v594_v22 }
 0x215   :  { %1128 = vmatmul.mubr.bf16.gmra.mrb[28].mxu0 %v595_v21 }
 0x2d0   :  { %v1117_v23 = vpop.f32.mrb[16].mxu0 }
 0x2d1   :  { %v695_v24 = vpop.f32.mrb[17].mxu0 }
 0x2d2   :  { %v1118_v25 = vpop.f32.mrb[18].mxu0 }
 0x2d3   :  { %v759_v16 = vpack.c.bf16 %v1118_v25, %v1117_v23  ;;  %v698_v27 = vpop.f32.mrb[19].mxu0 }
 0x2d4   :  { %v758_v28 = vpack.c.bf16 %v698_v27, %v695_v24 }
 0x2d6   :  { %1131 = vmatprep.subr.bf16.mxu1 %v758_v28 }
 0x2d7   :  { %1132 = vmatpush3.bf16.msra.mxu1 %v758_v28 }
 0x2d8   :  { %v1121_v29 = vpop.f32.mrb[20].mxu0  ;;  %1133 = vmatprep.subr.bf16.mxu1 %v759_v16 }
 0x2d9   :  { %v711_v31 = vpop.f32.mrb[21].mxu0 }
 0x2da   :  { %v1122_v32 = vpop.f32.mrb[22].mxu0 }
 0x2db   :  { %v761_v33 = vpack.c.bf16 %v1122_v32, %v1121_v29  ;;  %v714_v35 = vpop.f32.mrb[23].mxu0  ;;  %1134 = vmatpush3.bf16.msra.mxu1 %v759_v16 }
 0x2dc   :  { %v760_v36 = vpack.c.bf16 %v714_v35, %v711_v31 }
 0x2de   :  { %1135 = vmatprep.subr.bf16.mxu1 %v760_v36 }
 0x2df   :  { %1136 = vmatpush3.bf16.msra.mxu1 %v760_v36 }
 0x2e0   :  { %v1125_v38 = vpop.f32.mrb[24].mxu0  ;;  %1137 = vmatprep.subr.bf16.mxu1 %v761_v33 }
 0x2e1   :  { %v727_v39 = vpop.f32.mrb[25].mxu0 }
 0x2e2   :  { %v1126_v40 = vpop.f32.mrb[26].mxu0 }
 0x2e3   :  { %v763_v41 = vpack.c.bf16 %v1126_v40, %v1125_v38  ;;  %v730_v42 = vpop.f32.mrb[27].mxu0  ;;  %1138 = vmatpush3.bf16.msra.mxu1 %v761_v33 }
 0x2e4   :  { %v762_v43 = vpack.c.bf16 %v730_v42, %v727_v39 }
 0x2e6   :  { %1139 = vmatprep.subr.bf16.mxu1 %v762_v43 }
 0x2e7   :  { %1140 = vmatpush3.bf16.msra.mxu1 %v762_v43 }
 0x2e8   :  { %v1129_v45 = vpop.f32.mrb[28].mxu0  ;;  %1141 = vmatprep.subr.bf16.mxu1 %v763_v41 }
 0x2e9   :  { %v743_v46 = vpop.f32.mrb[29].mxu0 }
 0x2ea   :  { %v1130_v47 = vpop.f32.mrb[30].mxu0 }
 0x2eb   :  { %v765_v48 = vpack.c.bf16 %v1130_v47, %v1129_v45  ;;  %v746_v50 = vpop.f32.mrb[31].mxu0  ;;  %1142 = vmatpush3.bf16.msra.mxu1 %v763_v41 }
 0x2ec   :  { %v764_v51 = vpack.c.bf16 %v746_v50, %v743_v46 }
 0x2ee   :  { %1143 = vmatprep.subr.bf16.mxu1 %v764_v51 }
 0x2ef   :  { %1144 = vmatpush3.bf16.msra.mxu1 %v764_v51 }
 0x2f0   :  { %1145 = vmatprep.subr.bf16.mxu1 %v765_v48 }
 0x2f3   :  { %1146 = vmatpush3.bf16.msra.mxu1 %v765_v48 }
 0x2f6   :  { %1148 = vmatmul.mubr.bf16.vlgmr.msra.gmra.mrb[16].mxu1 %v1359_v63 }
 0x2f7   :  { %1151 = vmatprep.mubr.bf16.mxu1 %v1364_v0 }
 0x2fe   :  { %1152 = vmatmul.mubr.bf16.gmra.mrb[20].mxu1 %v1371_v1 }
 0x2ff   :  { %1155 = vmatprep.mubr.bf16.mxu1 %v1376_v2 }
 0x306   :  { %1156 = vmatmul.mubr.bf16.gmra.mrb[24].mxu1 %v1383_v3 }
 0x307   :  { %1159 = vmatprep.mubr.bf16.mxu1 %v1388_v4 }
 0x30e   :  { %1160 = vmatmul.mubr.bf16.gmra.mrb[28].mxu1 %v1395_v5 }
 0x3c9   :  { %v1149_v53 = vpop.f32.mrb[16].mxu1 }
 0x3ca   :  { %v865_v63 = vmul.f32 %v1149_v53, %v1410_v10  ;;  %v800_v54 = vpop.f32.mrb[17].mxu1 }
 0x3cb   :  { %v863_v0 = vmul.f32 %v800_v54, %v1408_v9  ;;  %v1150_v1 = vpop.f32.mrb[18].mxu1 }
 0x3cc   :  { %v887_v2 = vadd.f32 %v1503_v52, %v865_v63  ;;  %v866_v3 = vmul.f32 %v1150_v1, %v1414_v12  ;;  %v803_v56 = vpop.f32.mrb[19].mxu1 }
 0x3cd   :  { %v885_v4 = vadd.f32 %v1503_v52, %v863_v0  ;;  %v864_v5 = vmul.f32 %v803_v56, %v1412_v11 }
 0x3ce   :  { %v903_v57 = vmax.f32 %v887_v2, 0.0  ;;  %v888_v58 = vadd.f32 %v1503_v52, %v866_v3 }
 0x3cf   :  { %v901_v59 = vmax.f32 %v885_v4, 0.0  ;;  %v886_v60 = vadd.f32 %v1503_v52, %v864_v5 }
 0x3d0   :  { %919 = vst [vmem:[%s1592_s7 + $0x10] sm:$0xff] %v903_v57  ;;  %v904_v9 = vmax.f32 %v888_v58, 0.0 }
 0x3d1   :  { %917 = vst [vmem:[%s1592_s7] sm:$0xff] %v901_v59  ;;  %v902_v10 = vmax.f32 %v886_v60, 0.0  ;;  %v1153_v12 = vpop.f32.mrb[20].mxu1 }
 0x3d2   :  { %920 = vst [vmem:[%s1592_s7 + $0x18] sm:$0xff] %v904_v9  ;;  %v869_v11 = vmul.f32 %v1153_v12, %v1420_v15  ;;  %v816_v61 = vpop.f32.mrb[21].mxu1 }
 0x3d3   :  { %918 = vst [vmem:[%s1592_s7 + $0x8] sm:$0xff] %v902_v10  ;;  %v867_v62 = vmul.f32 %v816_v61, %v1416_v13  ;;  %v1154_v6 = vpop.f32.mrb[22].mxu1 }
 0x3d4   :  { %v891_v7 = vadd.f32 %v1503_v52, %v869_v11  ;;  %v870_v17 = vmul.f32 %v1154_v6, %v1428_v20  ;;  %v819_v18 = vpop.f32.mrb[23].mxu1 }
 0x3d5   :  { %v889_v19 = vadd.f32 %v1503_v52, %v867_v62  ;;  %v868_v21 = vmul.f32 %v819_v18, %v1418_v14 }
 0x3d6   :  { %v907_v22 = vmax.f32 %v891_v7, 0.0  ;;  %v892_v15 = vadd.f32 %v1503_v52, %v870_v17 }
 0x3d7   :  { %v905_v23 = vmax.f32 %v889_v19, 0.0  ;;  %v890_v24 = vadd.f32 %v1503_v52, %v868_v21 }
 0x3d8   :  { %923 = vst [vmem:[%s1592_s7 + $0x30] sm:$0xff] %v907_v22  ;;  %v908_v13 = vmax.f32 %v892_v15, 0.0 }
 0x3d9   :  { %921 = vst [vmem:[%s1592_s7 + $0x20] sm:$0xff] %v905_v23  ;;  %v906_v20 = vmax.f32 %v890_v24, 0.0  ;;  %v1157_v25 = vpop.f32.mrb[24].mxu1 }
 0x3da   :  { %924 = vst [vmem:[%s1592_s7 + $0x38] sm:$0xff] %v908_v13  ;;  %v873_v14 = vmul.f32 %v1157_v25, %v1449_v49  ;;  %v832_v16 = vpop.f32.mrb[25].mxu1 }
 0x3db   :  { %922 = vst [vmem:[%s1592_s7 + $0x28] sm:$0xff] %v906_v20  ;;  %v871_v27 = vmul.f32 %v832_v16, %v1436_v30  ;;  %v1158_v28 = vpop.f32.mrb[26].mxu1 }
 0x3dc   :  { %v895_v29 = vadd.f32 %v1503_v52, %v873_v14  ;;  %v874_v31 = vmul.f32 %v1158_v28, %v1454_v55  ;;  %v835_v32 = vpop.f32.mrb[27].mxu1 }
 0x3dd   :  { %v893_v33 = vadd.f32 %v1503_v52, %v871_v27  ;;  %v872_v35 = vmul.f32 %v835_v32, %v1439_v34 }
 0x3de   :  { %v911_v36 = vmax.f32 %v895_v29, 0.0  ;;  %v896_v49 = vadd.f32 %v1503_v52, %v874_v31 }
 0x3df   :  { %v909_v38 = vmax.f32 %v893_v33, 0.0  ;;  %v894_v39 = vadd.f32 %v1503_v52, %v872_v35 }
 0x3e0   :  { %927 = vst [vmem:[%s1592_s7 + $0x50] sm:$0xff] %v911_v36  ;;  %v912_v30 = vmax.f32 %v896_v49, 0.0 }
 0x3e1   :  { %925 = vst [vmem:[%s1592_s7 + $0x40] sm:$0xff] %v909_v38  ;;  %v910_v55 = vmax.f32 %v894_v39, 0.0  ;;  %v1161_v40 = vpop.f32.mrb[28].mxu1 }
 0x3e2   :  { %928 = vst [vmem:[%s1592_s7 + $0x58] sm:$0xff] %v912_v30  ;;  %v877_v34 = vmul.f32 %v1161_v40, %v1473_v37  ;;  %v848_v41 = vpop.f32.mrb[29].mxu1 }
 0x3e3   :  { %926 = vst [vmem:[%s1592_s7 + $0x48] sm:$0xff] %v910_v55  ;;  %v875_v42 = vmul.f32 %v848_v41, %v1460_v8  ;;  %v1162_v43 = vpop.f32.mrb[30].mxu1 }
 0x3e4   :  { %v899_v45 = vadd.f32 %v1503_v52, %v877_v34  ;;  %v878_v46 = vmul.f32 %v1162_v43, %v1478_v44  ;;  %v851_v47 = vpop.f32.mrb[31].mxu1 }
 0x3e5   :  { %v897_v48 = vadd.f32 %v1503_v52, %v875_v42  ;;  %v876_v50 = vmul.f32 %v851_v47, %v1467_v26 }
 0x3e6   :  { %v915_v51 = vmax.f32 %v899_v45, 0.0  ;;  %v900_v37 = vadd.f32 %v1503_v52, %v878_v46 }
 0x3e7   :  { %v913_v53 = vmax.f32 %v897_v48, 0.0  ;;  %v898_v63 = vadd.f32 %v1503_v52, %v876_v50 }
 0x3e8   :  { %931 = vst [vmem:[%s1592_s7 + $0x70] sm:$0xff] %v915_v51  ;;  %v916_v8 = vmax.f32 %v900_v37, 0.0 }
 0x3e9   :  { %929 = vst [vmem:[%s1592_s7 + $0x60] sm:$0xff] %v913_v53  ;;  %v914_v44 = vmax.f32 %v898_v63, 0.0 }
 0x3ea   :  { %932 = vst [vmem:[%s1592_s7 + $0x78] sm:$0xff] %v916_v8 }
 0x3eb   :  { %930 = vst [vmem:[%s1592_s7 + $0x68] sm:$0xff] %v914_v44 }

</bundles_post_ra>
